<compile_context>
chip_gen: v7x
topology: tpu7x:2x2x1
jax: 0.10.0
libtpu: 0.0.40
codegen_flags: <defaults>
</compile_context>

<pallas_src>
import functools

import jax
import jax.numpy as jnp
from jax.experimental import pallas as pl
from jax.experimental.pallas import tpu as pltpu


def _mhsa_kernel(x_ref, wqkv_ref, bqkv_ref, wo_ref, bo_ref, o_ref, *,
                 seq_len, compute_dtype, approx_recip):
    rows, Dp = x_ref.shape
    bt = rows // seq_len

    # Fused QKV projection: one MXU pass with M = bt*T rows (sublane-aligned by spec choice).
    qkv = jnp.dot(x_ref[...], wqkv_ref[...],
                  preferred_element_type=jnp.float32) + bqkv_ref[...]

    # Lane-aligned slices (Dp is a multiple of 128); 1/sqrt(D) already folded into Wq/bq.
    q = qkv[:, 0 * Dp:1 * Dp].reshape(bt, seq_len, Dp).astype(compute_dtype)
    k = qkv[:, 1 * Dp:2 * Dp].reshape(bt, seq_len, Dp).astype(compute_dtype)
    v = qkv[:, 2 * Dp:3 * Dp].reshape(bt, seq_len, Dp).astype(compute_dtype)

    # Scores: batched dot_general contracting the feature dim — no in-kernel transposes.
    s = jnp.einsum("btd,bsd->bts", q, k, preferred_element_type=jnp.float32)

    # Numerically-stable softmax over the key axis, kept in f32.
    # TODO(synk): flash-style KV tiling (online softmax) once bt*T*T f32 stops fitting VMEM.
    m = jnp.max(s, axis=-1, keepdims=True)
    e = jnp.exp(s - m)
    denom = jnp.sum(e, axis=-1, keepdims=True)
    p = e * pl.reciprocal(denom, approx=True) if approx_recip else e / denom

    attn = jnp.einsum("bts,bsd->btd", p.astype(compute_dtype), v,
                      preferred_element_type=jnp.float32)

    # Output projection over all rows (single MXU pass), stored lane/sublane-dense.
    y = jnp.dot(attn.reshape(rows, Dp).astype(compute_dtype), wo_ref[...],
                preferred_element_type=jnp.float32) + bo_ref[...]
    o_ref[...] = y.astype(o_ref.dtype)


def _round_up(n, m):
    return (n + m - 1) // m * m


def _chip_profile():
    """(vmem_budget_bytes, dual_tensorcore) derived from the actual chip."""
    kind = ""
    try:
        kind = jax.devices()[0].device_kind.lower()
    except Exception:
        pass
    phys = None
    try:
        phys = int(pltpu.get_tpu_info().vmem_capacity_bytes)
    except Exception:
        phys = None
    if phys is None:
        phys = (64 << 20) if "v7" in kind else (128 << 20)
    dual_tc = ("v7" in kind) or (phys <= (64 << 20))
    # v7x: 64 -> 56 MiB/TC usable; v5e/v6e: 128 -> ~104 MiB (scoped default is only 16/32).
    headroom = (8 << 20) if dual_tc else (24 << 20)
    return max(phys - headroom, 16 << 20), dual_tc


def _vmem_estimate(bt, T, Dp, csize, osize):
    """Conservative per-step VMEM footprint (bytes) for a (bt*T, Dp) tile."""
    rows = bt * T
    stream = 2 * rows * Dp * (csize + osize)        # x + out blocks, double-buffered
    weights = 4 * Dp * Dp * csize + 4 * Dp * 4      # wqkv + wo (single-buffered) + f32 biases
    proj = rows * 3 * Dp * (4 + csize)              # f32 qkv + compute-dtype q/k/v copies
    scores = bt * T * T * (4 + 4 + csize)           # s, e (f32) and p (compute) live together
    outp = rows * Dp * (4 + csize + 4)              # f32 attn, cast copy, f32 y
    return stream + weights + proj + scores + outp


def _pick_batch_tile(B, T, Dp, csize, osize, budget, dual_tc, target_rows=1024):
    """Largest divisor of B whose tile fits the VMEM budget, keeps bt*T sublane-aligned
    (bt*T % 8 == 0, or bt == B), stays <= target_rows per step, and (on dual-TC chips only)
    leaves >= 2 grid steps so both TensorCores get work."""
    cands = [bt for bt in range(1, B + 1)
             if B % bt == 0 and ((bt * T) % 8 == 0 or bt == B)]
    if not cands:
        cands = [B]
    fitting = [bt for bt in cands if _vmem_estimate(bt, T, Dp, csize, osize) <= budget]
    if not fitting:
        return cands[0]   # smallest legal tile; TODO(synk): flash KV tiling for this regime
    pool = fitting
    if dual_tc:
        two_step = [bt for bt in fitting if B // bt >= 2]
        if two_step:
            pool = two_step
    under = [bt for bt in pool if bt * T <= target_rows]
    return max(under) if under else min(pool)


def multi_head_self_attention(x, params, *, compute_dtype=jnp.bfloat16, batch_tile=None,
                              approx_reciprocal=True, out_dtype=None, return_padded=False):
    """Pallas TPU forward of the reference MultiHeadSelfAttention (eval mode).

    x: [B, T, D]. params: PyTorch nn.Linear layout ([out, in] weights, [out] biases).
    out_dtype defaults to x.dtype; return_padded=True keeps the lane-padded Dp axis
    (skips the post-kernel slice) for consumers that accept it.
    """
    B, T, D = x.shape
    out_dtype = x.dtype if out_dtype is None else out_dtype
    Dp = _round_up(D, 128)            # lane-dense padding: full-width loads/stores
    pad = Dp - D
    scale = 1.0 / (D ** 0.5)          # uses the ORIGINAL embed dim, like the reference
    f32 = jnp.float32

    def prep_w(w, s=1.0):
        # nn.Linear stores W as [out, in]; pre-transpose once wrapper-side so the kernel
        # computes x @ W directly; zero-pad to Dp x Dp (exact), cast to compute dtype.
        wt = jnp.asarray(w, f32).T * s
        return jnp.pad(wt, ((0, pad), (0, pad))).astype(compute_dtype)

    def prep_b(b, s=1.0):
        return jnp.pad(jnp.asarray(b, f32) * s, (0, pad))   # biases stay f32

    # Fuse Q/K/V weights into one [Dp, 3Dp] operand; fold the softmax scale into Q.
    wqkv = jnp.concatenate(
        [prep_w(params["wq"], scale), prep_w(params["wk"]), prep_w(params["wv"])], axis=1)
    bqkv = jnp.concatenate(
        [prep_b(params["bq"], scale), prep_b(params["bk"]), prep_b(params["bv"])]
    ).reshape(1, 3 * Dp)
    wo = prep_w(params["wo"])
    bo = prep_b(params["bo"]).reshape(1, Dp)

    xp = jnp.pad(x, ((0, 0), (0, 0), (0, pad))) if pad else x
    # Pre-flattened (B*T, Dp): projection path streams 2-D, sublane/lane-dense tiles.
    xp = xp.astype(compute_dtype).reshape(B * T, Dp)

    csize = jnp.dtype(compute_dtype).itemsize
    osize = jnp.dtype(out_dtype).itemsize
    budget, dual_tc = _chip_profile()
    bt = batch_tile if batch_tile is not None else _pick_batch_tile(
        B, T, Dp, csize, osize, budget, dual_tc)
    assert B % bt == 0, "batch_tile must divide the batch"
    rows = bt * T
    assert rows % 8 == 0 or bt == B, "bt*T must be sublane-aligned (or bt == B)"
    grid = (B // bt,)

    est = _vmem_estimate(bt, T, Dp, csize, osize)
    vmem_limit = int(min(max(est + (2 << 20), 32 << 20), budget))

    kernel = functools.partial(_mhsa_kernel, seq_len=T,
                               compute_dtype=compute_dtype, approx_recip=approx_reciprocal)

    def run(single_buffer_weights):
        # Constant index_maps: weights/biases stay VMEM-resident across the grid (no re-DMA
        # per step); Buffered(1) removes the default 2x buffering for these invariant blocks.
        pm = dict(pipeline_mode=pl.Buffered(1)) if single_buffer_weights else {}
        x_spec = pl.BlockSpec((rows, Dp), lambda i: (i, 0))
        o_spec = pl.BlockSpec((rows, Dp), lambda i: (i, 0))
        wqkv_spec = pl.BlockSpec((Dp, 3 * Dp), lambda i: (0, 0), **pm)
        bqkv_spec = pl.BlockSpec((1, 3 * Dp), lambda i: (0, 0), **pm)
        wo_spec = pl.BlockSpec((Dp, Dp), lambda i: (0, 0), **pm)
        bo_spec = pl.BlockSpec((1, Dp), lambda i: (0, 0), **pm)
        return pl.pallas_call(
            kernel,
            out_shape=jax.ShapeDtypeStruct((B * T, Dp), out_dtype),
            grid_spec=pltpu.PrefetchScalarGridSpec(
                num_scalar_prefetch=0,
                grid=grid,
                in_specs=[x_spec, wqkv_spec, bqkv_spec, wo_spec, bo_spec],
                out_specs=o_spec,
            ),
            compiler_params=pltpu.CompilerParams(
                dimension_semantics=("parallel",),
                vmem_limit_bytes=vmem_limit),
        )(xp, wqkv, bqkv, wo, bo)

    try:
        out = run(True)
    except Exception:
        # Fallback for toolchains that reject pipeline_mode=Buffered(1) on invariant blocks;
        # a genuine kernel error re-raises from this call as well.
        out = run(False)

    out = out.reshape(B, T, Dp)
    if pad and not return_padded:
        # Extra HBM pass; skip via return_padded=True if the consumer accepts the Dp layout.
        out = out[..., :D]
    return out


def _reference_jax(x, params):
    """Plain-JAX reference mirroring the PyTorch forward (eval mode)."""
    D = x.shape[-1]
    q = x @ params["wq"].T + params["bq"]
    k = x @ params["wk"].T + params["bk"]
    v = x @ params["wv"].T + params["bv"]
    s = jnp.einsum("btd,bsd->bts", q, k) / (D ** 0.5)
    w = jax.nn.softmax(s, axis=-1)
    out = jnp.einsum("bts,bsd->btd", w, v)
    return out @ params["wo"].T + params["bo"]


if __name__ == "__main__":
    B, T, D = 2, 8, 32
    num_heads = 4  # kept for parity with the module; the reference forward never splits heads

    key = jax.random.PRNGKey(0)
    keys = jax.random.split(key, 9)

    def init_linear(kw, kb, dim):
        bound = 1.0 / (dim ** 0.5)
        w = jax.random.uniform(kw, (dim, dim), jnp.float32, -bound, bound)
        b = jax.random.uniform(kb, (dim,), jnp.float32, -bound, bound)
        return w, b

    wq, bq = init_linear(keys[0], keys[1], D)
    wk, bk = init_linear(keys[2], keys[3], D)
    wv, bv = init_linear(keys[4], keys[5], D)
    wo, bo = init_linear(keys[6], keys[7], D)
    params = {"wq": wq, "bq": bq, "wk": wk, "bk": bk,
              "wv": wv, "bv": bv, "wo": wo, "bo": bo}

    x = jax.random.normal(keys[8], (B, T, D), jnp.float32)

    y_ref = _reference_jax(x, params)

    # f32 compute path: tight match vs the f32 reference (approx reciprocal is ~1e-4-rel).
    y_f32 = jax.block_until_ready(
        multi_head_self_attention(x, params, compute_dtype=jnp.float32))
    assert y_f32.shape == (B, T, D)
    assert jnp.allclose(y_f32, y_ref, atol=2e-3, rtol=2e-3), "f32 kernel mismatch vs reference"

    # Default bf16-operand path (MXU-rate on v5e/v6e/v7x): bf16 rounding needs a looser tolerance.
    y_bf16 = jax.block_until_ready(multi_head_self_attention(x, params))
    assert y_bf16.shape == (B, T, D)
    assert jnp.allclose(y_bf16, y_ref, atol=5e-2, rtol=5e-2), "bf16 kernel mismatch vs reference"

    print("KERNEL_OK")
</pallas_src>

<mosaic_0001>
module attributes {stable_mosaic.version = 11 : i64} {
  func.func @_mhsa_kernel(%arg0: i32, %arg1: memref<16x128xf32, #tpu.memory_space<vmem>>, %arg2: memref<128x384xf32, #tpu.memory_space<vmem>>, %arg3: memref<1x384xf32, #tpu.memory_space<vmem>>, %arg4: memref<128x128xf32, #tpu.memory_space<vmem>>, %arg5: memref<1x128xf32, #tpu.memory_space<vmem>>, %arg6: memref<16x128xf32, #tpu.memory_space<vmem>>) attributes {dimension_semantics = [#tpu.dimension_semantics<parallel>], iteration_bounds = array<i64: 1>, scalar_prefetch = 0 : i64, scratch_operands = 0 : i64, tpu.core_type = #tpu.core_type<tc>, window_params = [{transform_indices = @transform_0, window_bounds = array<i64: 16, 128>}, {pipeline_mode = #tpu.pipeline_mode<synchronous>, transform_indices = @transform_1, window_bounds = array<i64: 128, 384>}, {pipeline_mode = #tpu.pipeline_mode<synchronous>, transform_indices = @transform_2, window_bounds = array<i64: 1, 384>}, {pipeline_mode = #tpu.pipeline_mode<synchronous>, transform_indices = @transform_3, window_bounds = array<i64: 128, 128>}, {pipeline_mode = #tpu.pipeline_mode<synchronous>, transform_indices = @transform_4, window_bounds = array<i64: 1, 128>}, {transform_indices = @transform_5, window_bounds = array<i64: 16, 128>}]} {
    %c0 = arith.constant 0 : index
    %c0_0 = arith.constant 0 : index
    %0 = vector.load %arg1[%c0, %c0_0] : memref<16x128xf32, #tpu.memory_space<vmem>>, vector<16x128xf32>
    %c0_1 = arith.constant 0 : index
    %c0_2 = arith.constant 0 : index
    %1 = vector.load %arg2[%c0_1, %c0_2] : memref<128x384xf32, #tpu.memory_space<vmem>>, vector<128x384xf32>
    %cst = arith.constant dense<0.000000e+00> : vector<16x384xf32>
    %2 = tpu.matmul %0, %1, %cst {dimension_numbers = #tpu.dot_dimension_numbers<[1], [0], [0], [1], [0, 0, 1, 1], [], []>} : vector<16x128xf32>, vector<128x384xf32>, vector<16x384xf32> -> vector<16x384xf32>
    %c0_3 = arith.constant 0 : index
    %c0_4 = arith.constant 0 : index
    %3 = vector.load %arg3[%c0_3, %c0_4] : memref<1x384xf32, #tpu.memory_space<vmem>>, vector<1x384xf32>
    %4 = vector.broadcast %3 : vector<1x384xf32> to vector<16x384xf32>
    %5 = arith.addf %2, %4 : vector<16x384xf32>
    %6 = vector.extract_strided_slice %5 {offsets = [0, 0], sizes = [16, 128], strides = [1, 1]} : vector<16x384xf32> to vector<16x128xf32>
    %7 = vector.shape_cast %6 : vector<16x128xf32> to vector<2x8x128xf32>
    %8 = vector.extract_strided_slice %5 {offsets = [0, 128], sizes = [16, 128], strides = [1, 1]} : vector<16x384xf32> to vector<16x128xf32>
    %9 = vector.shape_cast %8 : vector<16x128xf32> to vector<2x8x128xf32>
    %10 = vector.extract_strided_slice %5 {offsets = [0, 256], sizes = [16, 128], strides = [1, 1]} : vector<16x384xf32> to vector<16x128xf32>
    %11 = vector.shape_cast %10 : vector<16x128xf32> to vector<2x8x128xf32>
    "tpu.trace_start"() <{level = 10 : i32, message = "btd,bsd->bts"}> : () -> ()
    %cst_5 = arith.constant dense<0.000000e+00> : vector<2x8x8xf32>
    %12 = tpu.matmul %7, %9, %cst_5 {dimension_numbers = #tpu.dot_dimension_numbers<[2], [2], [1], [1], [0, 0, 0, 1, 1, 1], [0], [0]>} : vector<2x8x128xf32>, vector<2x8x128xf32>, vector<2x8x8xf32> -> vector<2x8x8xf32>
    "tpu.trace_stop"() : () -> ()
    %cst_6 = arith.constant dense<0xFF800000> : vector<2x8xf32>
    %13 = vector.multi_reduction <maximumf>, %12, %cst_6 [2] : vector<2x8x8xf32> to vector<2x8xf32>
    %14 = vector.shape_cast %13 : vector<2x8xf32> to vector<2x8x1xf32>
    %15 = vector.broadcast %14 : vector<2x8x1xf32> to vector<2x8x8xf32>
    %16 = arith.subf %12, %15 : vector<2x8x8xf32>
    %17 = math.exp %16 : vector<2x8x8xf32>
    %cst_7 = arith.constant dense<0.000000e+00> : vector<2x8xf32>
    %18 = vector.multi_reduction <add>, %17, %cst_7 [2] : vector<2x8x8xf32> to vector<2x8xf32>
    %19 = vector.shape_cast %18 : vector<2x8xf32> to vector<2x8x1xf32>
    %20 = tpu.reciprocal %19 {approx = true} : vector<2x8x1xf32> -> vector<2x8x1xf32>
    %21 = vector.broadcast %20 : vector<2x8x1xf32> to vector<2x8x8xf32>
    %22 = arith.mulf %17, %21 : vector<2x8x8xf32>
    "tpu.trace_start"() <{level = 10 : i32, message = "bts,bsd->btd"}> : () -> ()
    %cst_8 = arith.constant dense<0.000000e+00> : vector<2x8x128xf32>
    %23 = tpu.matmul %22, %11, %cst_8 {dimension_numbers = #tpu.dot_dimension_numbers<[2], [1], [1], [2], [0, 0, 0, 1, 1, 2], [0], [0]>} : vector<2x8x8xf32>, vector<2x8x128xf32>, vector<2x8x128xf32> -> vector<2x8x128xf32>
    "tpu.trace_stop"() : () -> ()
    %24 = vector.shape_cast %23 : vector<2x8x128xf32> to vector<16x128xf32>
    %c0_9 = arith.constant 0 : index
    %c0_10 = arith.constant 0 : index
    %25 = vector.load %arg4[%c0_9, %c0_10] : memref<128x128xf32, #tpu.memory_space<vmem>>, vector<128x128xf32>
    %cst_11 = arith.constant dense<0.000000e+00> : vector<16x128xf32>
    %26 = tpu.matmul %24, %25, %cst_11 {dimension_numbers = #tpu.dot_dimension_numbers<[1], [0], [0], [1], [0, 0, 1, 1], [], []>} : vector<16x128xf32>, vector<128x128xf32>, vector<16x128xf32> -> vector<16x128xf32>
    %c0_12 = arith.constant 0 : index
    %c0_13 = arith.constant 0 : index
    %27 = vector.load %arg5[%c0_12, %c0_13] : memref<1x128xf32, #tpu.memory_space<vmem>>, vector<1x128xf32>
    %28 = vector.broadcast %27 : vector<1x128xf32> to vector<16x128xf32>
    %29 = arith.addf %26, %28 : vector<16x128xf32>
    %c0_14 = arith.constant 0 : index
    %c0_15 = arith.constant 0 : index
    %30 = vector.load %arg6[%c0_14, %c0_15] : memref<16x128xf32, #tpu.memory_space<vmem>>, vector<16x128xf32>
    tpu.vector_store %arg6[%c0_14, %c0_15], %29 {strides = array<i32>} : memref<16x128xf32, #tpu.memory_space<vmem>>, vector<16x128xf32>,
    return
  }
  func.func @transform_0(%arg0: i32) -> (i32, i32) {
    %c0_i32 = arith.constant 0 : i32
    %c0_i32_0 = arith.constant 0 : i32
    return %arg0, %c0_i32 : i32, i32
  }
  func.func @transform_1(%arg0: i32) -> (i32, i32) {
    %c0_i32 = arith.constant 0 : i32
    %c0_i32_0 = arith.constant 0 : i32
    %c0_i32_1 = arith.constant 0 : i32
    return %c0_i32, %c0_i32_0 : i32, i32
  }
  func.func @transform_2(%arg0: i32) -> (i32, i32) {
    %c0_i32 = arith.constant 0 : i32
    %c0_i32_0 = arith.constant 0 : i32
    %c0_i32_1 = arith.constant 0 : i32
    return %c0_i32, %c0_i32_0 : i32, i32
  }
  func.func @transform_3(%arg0: i32) -> (i32, i32) {
    %c0_i32 = arith.constant 0 : i32
    %c0_i32_0 = arith.constant 0 : i32
    %c0_i32_1 = arith.constant 0 : i32
    return %c0_i32, %c0_i32_0 : i32, i32
  }
  func.func @transform_4(%arg0: i32) -> (i32, i32) {
    %c0_i32 = arith.constant 0 : i32
    %c0_i32_0 = arith.constant 0 : i32
    %c0_i32_1 = arith.constant 0 : i32
    return %c0_i32, %c0_i32_0 : i32, i32
  }
  func.func @transform_5(%arg0: i32) -> (i32, i32) {
    %c0_i32 = arith.constant 0 : i32
    %c0_i32_0 = arith.constant 0 : i32
    return %arg0, %c0_i32 : i32, i32
  }
}

module attributes {stable_mosaic.version = 11 : i64} {
  func.func @_mhsa_kernel(%arg0: i32, %arg1: memref<16x128xf32, #tpu.memory_space<vmem>>, %arg2: memref<128x384xf32, #tpu.memory_space<vmem>>, %arg3: memref<1x384xf32, #tpu.memory_space<vmem>>, %arg4: memref<128x128xf32, #tpu.memory_space<vmem>>, %arg5: memref<1x128xf32, #tpu.memory_space<vmem>>, %arg6: memref<16x128xf32, #tpu.memory_space<vmem>>) attributes {dimension_semantics = [#tpu.dimension_semantics<parallel>], iteration_bounds = array<i64: 1>, scalar_prefetch = 0 : i64, scratch_operands = 0 : i64, tpu.core_type = #tpu.core_type<tc>, window_params = [{transform_indices = @transform_0, window_bounds = array<i64: 16, 128>}, {pipeline_mode = #tpu.pipeline_mode<synchronous>, transform_indices = @transform_1, window_bounds = array<i64: 128, 384>}, {pipeline_mode = #tpu.pipeline_mode<synchronous>, transform_indices = @transform_2, window_bounds = array<i64: 1, 384>}, {pipeline_mode = #tpu.pipeline_mode<synchronous>, transform_indices = @transform_3, window_bounds = array<i64: 128, 128>}, {pipeline_mode = #tpu.pipeline_mode<synchronous>, transform_indices = @transform_4, window_bounds = array<i64: 1, 128>}, {transform_indices = @transform_5, window_bounds = array<i64: 16, 128>}]} {
    %c0 = arith.constant 0 : index
    %c0_0 = arith.constant 0 : index
    %0 = vector.load %arg1[%c0, %c0_0] : memref<16x128xf32, #tpu.memory_space<vmem>>, vector<16x128xf32>
    %c0_1 = arith.constant 0 : index
    %c0_2 = arith.constant 0 : index
    %1 = vector.load %arg2[%c0_1, %c0_2] : memref<128x384xf32, #tpu.memory_space<vmem>>, vector<128x384xf32>
    %cst = arith.constant dense<0.000000e+00> : vector<16x384xf32>
    %2 = tpu.matmul %0, %1, %cst {dimension_numbers = #tpu.dot_dimension_numbers<[1], [0], [0], [1], [0, 0, 1, 1], [], []>} : vector<16x128xf32>, vector<128x384xf32>, vector<16x384xf32> -> vector<16x384xf32>
    %c0_3 = arith.constant 0 : index
    %c0_4 = arith.constant 0 : index
    %3 = vector.load %arg3[%c0_3, %c0_4] : memref<1x384xf32, #tpu.memory_space<vmem>>, vector<1x384xf32>
    %4 = vector.broadcast %3 : vector<1x384xf32> to vector<16x384xf32>
    %5 = arith.addf %2, %4 : vector<16x384xf32>
    %6 = vector.extract_strided_slice %5 {offsets = [0, 0], sizes = [16, 128], strides = [1, 1]} : vector<16x384xf32> to vector<16x128xf32>
    %7 = vector.shape_cast %6 : vector<16x128xf32> to vector<2x8x128xf32>
    %8 = vector.extract_strided_slice %5 {offsets = [0, 128], sizes = [16, 128], strides = [1, 1]} : vector<16x384xf32> to vector<16x128xf32>
    %9 = vector.shape_cast %8 : vector<16x128xf32> to vector<2x8x128xf32>
    %10 = vector.extract_strided_slice %5 {offsets = [0, 256], sizes = [16, 128], strides = [1, 1]} : vector<16x384xf32> to vector<16x128xf32>
    %11 = vector.shape_cast %10 : vector<16x128xf32> to vector<2x8x128xf32>
    "tpu.trace_start"() <{level = 10 : i32, message = "btd,bsd->bts"}> : () -> ()
    %cst_5 = arith.constant dense<0.000000e+00> : vector<2x8x8xf32>
    %12 = tpu.matmul %7, %9, %cst_5 {dimension_numbers = #tpu.dot_dimension_numbers<[2], [2], [1], [1], [0, 0, 0, 1, 1, 1], [0], [0]>} : vector<2x8x128xf32>, vector<2x8x128xf32>, vector<2x8x8xf32> -> vector<2x8x8xf32>
    "tpu.trace_stop"() : () -> ()
    %cst_6 = arith.constant dense<0xFF800000> : vector<2x8xf32>
    %13 = vector.multi_reduction <maximumf>, %12, %cst_6 [2] : vector<2x8x8xf32> to vector<2x8xf32>
    %14 = vector.shape_cast %13 : vector<2x8xf32> to vector<2x8x1xf32>
    %15 = vector.broadcast %14 : vector<2x8x1xf32> to vector<2x8x8xf32>
    %16 = arith.subf %12, %15 : vector<2x8x8xf32>
    %17 = math.exp %16 : vector<2x8x8xf32>
    %cst_7 = arith.constant dense<0.000000e+00> : vector<2x8xf32>
    %18 = vector.multi_reduction <add>, %17, %cst_7 [2] : vector<2x8x8xf32> to vector<2x8xf32>
    %19 = vector.shape_cast %18 : vector<2x8xf32> to vector<2x8x1xf32>
    %20 = tpu.reciprocal %19 {approx = true} : vector<2x8x1xf32> -> vector<2x8x1xf32>
    %21 = vector.broadcast %20 : vector<2x8x1xf32> to vector<2x8x8xf32>
    %22 = arith.mulf %17, %21 : vector<2x8x8xf32>
    "tpu.trace_start"() <{level = 10 : i32, message = "bts,bsd->btd"}> : () -> ()
    %cst_8 = arith.constant dense<0.000000e+00> : vector<2x8x128xf32>
    %23 = tpu.matmul %22, %11, %cst_8 {dimension_numbers = #tpu.dot_dimension_numbers<[2], [1], [1], [2], [0, 0, 0, 1, 1, 2], [0], [0]>} : vector<2x8x8xf32>, vector<2x8x128xf32>, vector<2x8x128xf32> -> vector<2x8x128xf32>
    "tpu.trace_stop"() : () -> ()
    %24 = vector.shape_cast %23 : vector<2x8x128xf32> to vector<16x128xf32>
    %c0_9 = arith.constant 0 : index
    %c0_10 = arith.constant 0 : index
    %25 = vector.load %arg4[%c0_9, %c0_10] : memref<128x128xf32, #tpu.memory_space<vmem>>, vector<128x128xf32>
    %cst_11 = arith.constant dense<0.000000e+00> : vector<16x128xf32>
    %26 = tpu.matmul %24, %25, %cst_11 {dimension_numbers = #tpu.dot_dimension_numbers<[1], [0], [0], [1], [0, 0, 1, 1], [], []>} : vector<16x128xf32>, vector<128x128xf32>, vector<16x128xf32> -> vector<16x128xf32>
    %c0_12 = arith.constant 0 : index
    %c0_13 = arith.constant 0 : index
    %27 = vector.load %arg5[%c0_12, %c0_13] : memref<1x128xf32, #tpu.memory_space<vmem>>, vector<1x128xf32>
    %28 = vector.broadcast %27 : vector<1x128xf32> to vector<16x128xf32>
    %29 = arith.addf %26, %28 : vector<16x128xf32>
    %c0_14 = arith.constant 0 : index
    %c0_15 = arith.constant 0 : index
    %30 = vector.load %arg6[%c0_14, %c0_15] : memref<16x128xf32, #tpu.memory_space<vmem>>, vector<16x128xf32>
    tpu.vector_store %arg6[%c0_14, %c0_15], %29 {strides = array<i32>} : memref<16x128xf32, #tpu.memory_space<vmem>>, vector<16x128xf32>,
    return
  }
  func.func @transform_0(%arg0: i32) -> (i32, i32) {
    %c0_i32 = arith.constant 0 : i32
    %c0_i32_0 = arith.constant 0 : i32
    return %arg0, %c0_i32 : i32, i32
  }
  func.func @transform_1(%arg0: i32) -> (i32, i32) {
    %c0_i32 = arith.constant 0 : i32
    %c0_i32_0 = arith.constant 0 : i32
    %c0_i32_1 = arith.constant 0 : i32
    return %c0_i32, %c0_i32_0 : i32, i32
  }
  func.func @transform_2(%arg0: i32) -> (i32, i32) {
    %c0_i32 = arith.constant 0 : i32
    %c0_i32_0 = arith.constant 0 : i32
    %c0_i32_1 = arith.constant 0 : i32
    return %c0_i32, %c0_i32_0 : i32, i32
  }
  func.func @transform_3(%arg0: i32) -> (i32, i32) {
    %c0_i32 = arith.constant 0 : i32
    %c0_i32_0 = arith.constant 0 : i32
    %c0_i32_1 = arith.constant 0 : i32
    return %c0_i32, %c0_i32_0 : i32, i32
  }
  func.func @transform_4(%arg0: i32) -> (i32, i32) {
    %c0_i32 = arith.constant 0 : i32
    %c0_i32_0 = arith.constant 0 : i32
    %c0_i32_1 = arith.constant 0 : i32
    return %c0_i32, %c0_i32_0 : i32, i32
  }
  func.func @transform_5(%arg0: i32) -> (i32, i32) {
    %c0_i32 = arith.constant 0 : i32
    %c0_i32_0 = arith.constant 0 : i32
    return %arg0, %c0_i32 : i32, i32
  }
}

</mosaic_0001>

<bundles_post_ra>
// kernel: tpu_custom_call.1
= control target key start
LH: loop header
LB: loop body
LE: loop exit
PB: predicated region body
PF: predicated region fallthrough
CT: control target
= control target key end

     0   :  { %10 = vsyncpa [#allocation3], 0  ;;  %s1190_s0 = inlined_call_operand.hbm [shape: f32[16,128], index: 0, kind: input, shape index: {}]   ;;  %s1191_s1 = inlined_call_operand.hbm [shape: f32[128,384], index: 1, kind: input, shape index: {}]   ;;  %s1192_s2 = inlined_call_operand.vmem [shape: f32[1,384], index: 2, kind: input, shape index: {}]   ;;  %s1193_s3 = inlined_call_operand.hbm [shape: f32[128,128], index: 3, kind: input, shape index: {}]   ;;  %s1194_s4 = inlined_call_operand.vmem [shape: f32[1,128], index: 4, kind: input, shape index: {}]   ;;  %s1195_s5 = inlined_call_operand.hbm [shape: f32[16,128], index: 5, kind: output, shape index: {}]  }
   0x1   :  { %11 = vsyncpa [#allocation6], 0 }
   0x2   :  { %12 = vsyncpa [#allocation4], 0  ;;  %s1053_s18 = smov [#allocation5]   ;;  %s959_s22 = scalar_lea.hbm %s1191_s1, 6144 }
   0x3   :  { %s30_s19 = sshll.u32 %s1053_s18, 4  ;;  %p960_p0 = scmp.ne.s32.totalorder %s1191_s1, %s959_s22  ;;  %s31_s19 = int_to_ptr.vmem [resolvable:$true] %s30_s19 }
   0x4   :  { %p963_p1 = scmp.lt.u32.totalorder %s959_s22, %s1191_s1 }
   0x6   :  { %p965_p2 = pnand %p963_p1, %p960_p0 }
   0x8   :  { %968 = shalt.err (!%p965_p2)
}
   0x9   :  { %s969_s27 = scalar_lea.vmem %s31_s19, 6144  ;;  %p974_p4 = scmp.lt.s32.totalorder %s31_s19, %s31_s19 }
   0xa   :  { %p970_p3 = scmp.ne.s32.totalorder %s31_s19, %s969_s27  ;;  %p975_p5 = scmp.lt.s32.totalorder %s969_s27, %s969_s27 }
   0xc   :  { %p976_p6 = por %p975_p5, %p974_p4 }
   0xe   :  { %p977_p7 = pnand %p976_p6, %p970_p3 }
  0x10   :  { %980 = shalt.err (!%p977_p7)
}
  0x11   :  { %s1054_s28 = smov 384   ;;  %s1055_s29 = smov 24  }
  0x12   :  { %36 = dma.hbm_to_vmem [thread:$0]  %s1191_s1, 6144, %s31_s19, [#allocation6], %s1054_s28, %s1054_s28, %s1055_s29  }
  0x13   :  { %s1056_s7 = smov [#allocation2]   ;;  %s981_s11 = scalar_lea.hbm %s1190_s0, 256 }
  0x14   :  { %s18_s8 = sshll.u32 %s1056_s7, 4  ;;  %p982_p8 = scmp.ne.s32.totalorder %s1190_s0, %s981_s11  ;;  %s19_s8 = int_to_ptr.vmem [resolvable:$true] %s18_s8 }
  0x15   :  { %p985_p9 = scmp.lt.u32.totalorder %s981_s11, %s1190_s0 }
  0x17   :  { %p987_p10 = pnand %p985_p9, %p982_p8 }
  0x19   :  { %990 = shalt.err (!%p987_p10)
}
  0x1a   :  { %s991_s16 = scalar_lea.vmem %s19_s8, 256  ;;  %p996_p12 = scmp.lt.s32.totalorder %s19_s8, %s19_s8 }
  0x1b   :  { %p992_p11 = scmp.ne.s32.totalorder %s19_s8, %s991_s16  ;;  %p997_p13 = scmp.lt.s32.totalorder %s991_s16, %s991_s16 }
  0x1d   :  { %p998_p0 = por %p997_p13, %p996_p12 }
  0x1f   :  { %p999_p1 = pnand %p998_p0, %p992_p11 }
  0x21   :  { %1002 = shalt.err (!%p999_p1)
}
  0x22   :  { %s1057_s1 = smov 128   ;;  %s1058_s17 = smov 8  }
  0x23   :  { %24 = dma.hbm_to_vmem [thread:$0]  %s1190_s0, 256, %s19_s8, [#allocation3], %s1057_s1, %s1057_s1, %s1058_s17  }
  0x24   :  { %s1059_s20 = smov [#allocation7]   ;;  %s1003_s24 = scalar_lea.hbm %s1193_s3, 2048 }
  0x25   :  { %s44_s21 = sshll.u32 %s1059_s20, 4  ;;  %p1004_p2 = scmp.ne.s32.totalorder %s1193_s3, %s1003_s24  ;;  %s45_s21 = int_to_ptr.vmem [resolvable:$true] %s44_s21 }
  0x26   :  { %p1007_p3 = scmp.lt.u32.totalorder %s1003_s24, %s1193_s3 }
  0x28   :  { %p1009_p4 = pnand %p1007_p3, %p1004_p2 }
  0x2a   :  { %1012 = shalt.err (!%p1009_p4)
}
  0x2b   :  { %s1013_s29 = scalar_lea.vmem %s45_s21, 2048  ;;  %p1018_p6 = scmp.lt.s32.totalorder %s45_s21, %s45_s21 }
  0x2c   :  { %p1014_p5 = scmp.ne.s32.totalorder %s45_s21, %s1013_s29  ;;  %p1019_p7 = scmp.lt.s32.totalorder %s1013_s29, %s1013_s29 }
  0x2e   :  { %p1020_p8 = por %p1019_p7, %p1018_p6 }
  0x30   :  { %p1021_p9 = pnand %p1020_p8, %p1014_p5 }
  0x32   :  { %1024 = shalt.err (!%p1021_p9)
}
  0x33   :  { %50 = dma.hbm_to_vmem [thread:$0]  %s1193_s3, 2048, %s45_s21, [#allocation6], %s1057_s1, %s1057_s1, %s1058_s17  }
  0x34   :  { %1047 = dma.done.wait [#allocation3], 256  }
  0x35   :  { %1048 = vsyncadd [#allocation3], 4294967040 }
  0x36   :  { %1049 = dma.done.wait [#allocation6], 8192  }
  0x37   :  { %1050 = vsyncadd [#allocation6], 4294959104  ;;  %v1060_v0 = vmov 0.0   ;;  %v65_v1 = vld [vmem:[#allocation5 + $0x8] sm:$0xff]  ;;  %v68_v2 = vld [vmem:[#allocation5 + $0x20] sm:$0xff]  ;;  %vm1061_vm0 = vmmov 0   ;;  %v114_v51 = vlaneseq }
  0x38   :  { %193 = vmatprep.mubr.f32.mxu0 %v1060_v0  ;;  %v64_v3 = vld [vmem:[#allocation5] sm:$0xff]  ;;  %v845_v4 = vpack.c.bf16 %v68_v2, %v65_v1  ;;  %v67_v5 = vld [vmem:[#allocation5 + $0x18] sm:$0xff]  ;;  %v74_v7 = vld [vmem:[#allocation5 + $0x50] sm:$0xff]  ;;  %vm421_vm1 = vcmask 64512   ;;  %s1062_s8 = smov [#allocation8]  }
  0x39   :  { %v71_v6 = vld [vmem:[#allocation5 + $0x38] sm:$0xff]  ;;  %v847_v8 = vpack.c.bf16 %v67_v5, %v64_v3  ;;  %v70_v10 = vld [vmem:[#allocation5 + $0x30] sm:$0xff]  ;;  %v73_v11 = vld [vmem:[#allocation5 + $0x48] sm:$0xff]  ;;  %v1143_v52 = vshrl.u32 %v114_v51, 7  ;;  %s695_s9 = sshll.u32 %s1062_s8, 4  ;;  %s696_s9 = int_to_ptr.vmem [resolvable:$true] %s695_s9 }
  0x3a   :  { %v849_v9 = vpack.c.bf16 %v74_v7, %v71_v6  ;;  %v77_v12 = vld [vmem:[#allocation5 + $0x68] sm:$0xff]  ;;  %846 = vmatprep.subr.bf16.mxu0 %v845_v4  ;;  %v80_v13 = vld [vmem:[#allocation5 + $0x80] sm:$0xff]  ;;  %v851_v14 = vpack.c.bf16 %v73_v11, %v70_v10  ;;  %v79_v17 = vld [vmem:[#allocation5 + $0x78] sm:$0xff]  ;;  %s1025_s10 = scalar_lea.vmem %s696_s9, 256  ;;  %p1030_p11 = scmp.lt.s32.totalorder %s696_s9, %s696_s9 }
  0x3b   :  { %848 = vmatpush1.bf16.msra.mxu0 %v847_v8  ;;  %v853_v15 = vpack.c.bf16 %v80_v13, %v77_v12  ;;  %v76_v16 = vld [vmem:[#allocation5 + $0x60] sm:$0xff]  ;;  %v83_v18 = vld [vmem:[#allocation5 + $0x98] sm:$0xff]  ;;  %v86_v19 = vld [vmem:[#allocation5 + $0xb0] sm:$0xff]  ;;  %v120_v53 = vsub.s32 1, %v1143_v52  ;;  %v116_v55 = vsub.s32 0, %v1143_v52  ;;  %p1026_p10 = scmp.ne.s32.totalorder %s696_s9, %s1025_s10  ;;  %p1031_p12 = scmp.lt.s32.totalorder %s1025_s10, %s1025_s10 }
  0x3c   :  { %850 = vmatprep.subr.bf16.mxu0 %v849_v9  ;;  %v855_v20 = vpack.c.bf16 %v79_v17, %v76_v16  ;;  %v857_v21 = vpack.c.bf16 %v86_v19, %v83_v18  ;;  %v82_v22 = vld [vmem:[#allocation5 + $0x90] sm:$0xff]  ;;  %v85_v23 = vld [vmem:[#allocation5 + $0xa8] sm:$0xff]  ;;  %v92_v25 = vld [vmem:[#allocation5 + $0xe0] sm:$0xff] }
  0x3d   :  { %v89_v24 = vld [vmem:[#allocation5 + $0xc8] sm:$0xff]  ;;  %v62_v26 = vld [vmem:[#allocation2] sm:$0xff]  ;;  %v859_v27 = vpack.c.bf16 %v85_v23, %v82_v22  ;;  %v88_v29 = vld [vmem:[#allocation5 + $0xc0] sm:$0xff]  ;;  %p1032_p13 = por %p1031_p12, %p1030_p11 }
  0x3e   :  { %787 = vmatprep.mubr.f32.mxu1 %v62_v26  ;;  %v861_v28 = vpack.c.bf16 %v92_v25, %v89_v24  ;;  %v91_v30 = vld [vmem:[#allocation5 + $0xd8] sm:$0xff]  ;;  %v98_v32 = vld [vmem:[#allocation5 + $0x110] sm:$0xff]  ;;  %v97_v36 = vld [vmem:[#allocation5 + $0x108] sm:$0xff] }
  0x3f   :  { %852 = vmatpush1.bf16.msra.mxu0 %v851_v14  ;;  %v95_v31 = vld [vmem:[#allocation5 + $0xf8] sm:$0xff]  ;;  %v863_v33 = vpack.c.bf16 %v91_v30, %v88_v29  ;;  %v94_v35 = vld [vmem:[#allocation5 + $0xf0] sm:$0xff]  ;;  %v101_v37 = vld [vmem:[#allocation5 + $0x128] sm:$0xff]  ;;  %p1033_p0 = pnand %p1032_p13, %p1026_p10 }
  0x40   :  { %854 = vmatprep.subr.bf16.mxu0 %v853_v15  ;;  %v865_v34 = vpack.c.bf16 %v98_v32, %v95_v31  ;;  %v104_v38 = vld [vmem:[#allocation5 + $0x140] sm:$0xff]  ;;  %v867_v39 = vpack.c.bf16 %v97_v36, %v94_v35  ;;  %v103_v42 = vld [vmem:[#allocation5 + $0x138] sm:$0xff]  ;;  %v110_v44 = vld [vmem:[#allocation5 + $0x170] sm:$0xff] }
  0x41   :  { %v869_v40 = vpack.c.bf16 %v104_v38, %v101_v37  ;;  %v100_v41 = vld [vmem:[#allocation5 + $0x120] sm:$0xff]  ;;  %v107_v43 = vld [vmem:[#allocation5 + $0x158] sm:$0xff]  ;;  %v106_v47 = vld [vmem:[#allocation5 + $0x150] sm:$0xff] }
  0x42   :  { %v871_v45 = vpack.c.bf16 %v103_v42, %v100_v41  ;;  %v873_v46 = vpack.c.bf16 %v110_v44, %v107_v43  ;;  %v109_v48 = vld [vmem:[#allocation5 + $0x168] sm:$0xff]  ;;  %v1138_v50 = vld [vmem:[#allocation2 + $0x8] sm:$0xff]  ;;  %v1149_v54 = vld [vmem:[%s1192_s2] sm:$0x7]  ;;  %v124_v43 = vsub.s32 2, %v1143_v52 }
  0x43   :  { %856 = vmatpush1.bf16.msra.mxu0 %v855_v20  ;;  %v875_v49 = vpack.c.bf16 %v109_v48, %v106_v47  ;;  %v121_v56 = vrot.slane %v1149_v54, %v120_v53  ;;  %v117_v58 = vrot.slane %v1149_v54, %v116_v55  ;;  %v66_v3 = vld [vmem:[#allocation5 + $0x10] sm:$0xff]  ;;  %v69_v4 = vld [vmem:[#allocation5 + $0x28] sm:$0xff]  ;;  %v72_v5 = vld [vmem:[#allocation5 + $0x40] sm:$0xff] }
  0x44   :  { %858 = vmatprep.subr.bf16.mxu0 %v857_v21  ;;  %v877_v6 = vpack.c.bf16 %v69_v4, %v66_v3  ;;  %v75_v7 = vld [vmem:[#allocation5 + $0x58] sm:$0xff]  ;;  %v78_v9 = vld [vmem:[#allocation5 + $0x70] sm:$0xff]  ;;  %v81_v10 = vld [vmem:[#allocation5 + $0x88] sm:$0xff]  ;;  %v125_v44 = vrot.slane %v1149_v54, %v124_v43 }
  0x45   :  { %v881_v8 = vpack.c.bf16 %v75_v7, %v72_v5  ;;  %v885_v11 = vpack.c.bf16 %v81_v10, %v78_v9  ;;  %v84_v12 = vld [vmem:[#allocation5 + $0xa0] sm:$0xff]  ;;  %v87_v13 = vld [vmem:[#allocation5 + $0xb8] sm:$0xff]  ;;  %v90_v15 = vld [vmem:[#allocation5 + $0xd0] sm:$0xff] }
  0x46   :  { %878 = vmatprep.subr.bf16.mxu1 %v877_v6  ;;  %v889_v14 = vpack.c.bf16 %v87_v13, %v84_v12  ;;  %v93_v16 = vld [vmem:[#allocation5 + $0xe8] sm:$0xff]  ;;  %v96_v18 = vld [vmem:[#allocation5 + $0x100] sm:$0xff]  ;;  %v99_v19 = vld [vmem:[#allocation5 + $0x118] sm:$0xff] }
  0x47   :  { %860 = vmatpush1.bf16.msra.mxu0 %v859_v27  ;;  %880 = vmatpush3.bf16.msra.mxu1 %v877_v6  ;;  %v893_v17 = vpack.c.bf16 %v93_v16, %v90_v15  ;;  %v897_v20 = vpack.c.bf16 %v99_v19, %v96_v18  ;;  %v102_v21 = vld [vmem:[#allocation5 + $0x130] sm:$0xff]  ;;  %v105_v22 = vld [vmem:[#allocation5 + $0x148] sm:$0xff]  ;;  %v108_v24 = vld [vmem:[#allocation5 + $0x160] sm:$0xff] }
  0x48   :  { %862 = vmatprep.subr.bf16.mxu0 %v861_v28  ;;  %882 = vmatprep.subr.bf16.mxu1 %v881_v8  ;;  %v901_v23 = vpack.c.bf16 %v105_v22, %v102_v21  ;;  %v111_v25 = vld [vmem:[#allocation5 + $0x178] sm:$0xff]  ;;  %v592_v51 = vld [vmem:[#allocation7 + $0x10] sm:$0xff]  ;;  %v602_v4 = vld [vmem:[#allocation7 + $0x60] sm:$0xff] }
  0x49   :  { %v593_v55 = vld [vmem:[#allocation7 + $0x18] sm:$0xff]  ;;  %v596_v54 = vld [vmem:[#allocation7 + $0x30] sm:$0xff]  ;;  %v603_v5 = vld [vmem:[#allocation7 + $0x68] sm:$0xff] }
  0x4a   :  { %v933_v6 = vpack.c.bf16 %v603_v5, %v602_v4  ;;  %v604_v13 = vld [vmem:[#allocation7 + $0x70] sm:$0xff] }
  0x4b   :  { %864 = vmatpush1.bf16.msra.mxu0 %v863_v33  ;;  %884 = vmatpush3.bf16.msra.mxu1 %v881_v8 }
  0x4c   :  { %866 = vmatprep.subr.bf16.mxu0 %v865_v34  ;;  %886 = vmatprep.subr.bf16.mxu1 %v885_v11 }
  0x4f   :  { %868 = vmatpush1.bf16.msra.mxu0 %v867_v39  ;;  %888 = vmatpush3.bf16.msra.mxu1 %v885_v11 }
  0x50   :  { %870 = vmatprep.subr.bf16.mxu0 %v869_v40  ;;  %890 = vmatprep.subr.bf16.mxu1 %v889_v14 }
  0x53   :  { %872 = vmatpush1.bf16.msra.mxu0 %v871_v45  ;;  %892 = vmatpush3.bf16.msra.mxu1 %v889_v14  ;;  %v605_v14 = vld [vmem:[#allocation7 + $0x78] sm:$0xff] }
  0x54   :  { %874 = vmatprep.subr.bf16.mxu0 %v873_v46  ;;  %894 = vmatprep.subr.bf16.mxu1 %v893_v17  ;;  %v937_v15 = vpack.c.bf16 %v605_v14, %v604_v13 }
  0x57   :  { %876 = vmatpush1.bf16.msra.mxu0 %v875_v49  ;;  %896 = vmatpush3.bf16.msra.mxu1 %v893_v17  ;;  %v590_v49 = vld [vmem:[#allocation7] sm:$0xff] }
  0x58   :  { %790 = vmatprep.subr.mxu0 %v1060_v0  ;;  %898 = vmatprep.subr.bf16.mxu1 %v897_v20 }
  0x5a   :  { %194 = vmatmul.mubr.f32.vlgmr.msra.gmra.mrb[0].mxu0 %v62_v26  ;;  %v905_v26 = vpack.c.bf16 %v111_v25, %v108_v24 }
  0x5b   :  { %199 = vmatprep.mubr.f32.mxu0 %v1060_v0  ;;  %900 = vmatpush3.bf16.msra.mxu1 %v897_v20  ;;  %v710_v20 = vld [vmem:[%s1194_s4] ss:$0 sm:$0xff] }
  0x5c   :  { %902 = vmatprep.subr.bf16.mxu1 %v901_v23 }
  0x5e   :  { %200 = vmatmul.mubr.f32.gmra.mrb[2].mxu0 %v1138_v50 }
  0x5f   :  { %792 = vmatprep.mubr.msk.f32.mxu0 %vm1061_vm0, %v1060_v0  ;;  %904 = vmatpush3.bf16.msra.mxu1 %v901_v23 }
  0x60   :  { %906 = vmatprep.subr.bf16.mxu1 %v905_v26 }
  0x63   :  { %908 = vmatpush3.bf16.msra.mxu1 %v905_v26 }
  0x66   :  { %788 = vmatmul.mubr.f32.vlgmr.msra.gmra.mrb[0].mxu1 %v1138_v50  ;;  %v591_v50 = vld [vmem:[#allocation7 + $0x8] sm:$0xff] }
  0x67   :  { %v909_v53 = vpack.c.bf16 %v591_v50, %v590_v49 }
  0x69   :  { %910 = vmatprep.subr.bf16.mxu1 %v909_v53 }
  0x6a   :  { %912 = vmatpush3.bf16.msra.mxu1 %v909_v53 }
 0x12d   :  { %v195_v57 = vpop.f32.mrb[0].mxu0 }
 0x12e   :  { %v197_v59 = vpop.f32.mrb[1].mxu0  ;;  %v196_v62 = vadd.f32 %v195_v57, %v117_v58  ;;  %v594_v57 = vld [vmem:[#allocation7 + $0x20] sm:$0xff] }
 0x12f   :  { %v198_v60 = vadd.f32 %v197_v59, %v121_v56  ;;  %v597_v59 = vld [vmem:[#allocation7 + $0x38] sm:$0xff] }
 0x131   :  { %v201_v61 = vpop.f32.mrb[2].mxu0  ;;  %791 = vmatpush3.xpose.msra.mxu0 %v198_v60  ;;  %v921_v60 = vpack.c.bf16 %v597_v59, %v596_v54 }
 0x132   :  { %v203_v63 = vpop.f32.mrb[3].mxu0  ;;  %795 = vmatprep.subr.mxu0 %v1060_v0  ;;  %v202_v2 = vadd.f32 %v201_v61, %v117_v58  ;;  %v595_v58 = vld [vmem:[#allocation7 + $0x28] sm:$0xff]  ;;  %v598_v61 = vld [vmem:[#allocation7 + $0x40] sm:$0xff] }
 0x133   :  { %v204_v1 = vadd.f32 %v203_v63, %v121_v56  ;;  %v913_v56 = vpack.c.bf16 %v593_v55, %v592_v51  ;;  %v917_v52 = vpack.c.bf16 %v595_v58, %v594_v57 }
 0x134   :  { %793 = vmatmul.mubr.f32.vlgmr.msra.gmra.mrb[4].mxu0 %v196_v62  ;;  %v599_v62 = vld [vmem:[#allocation7 + $0x48] sm:$0xff] }
 0x135   :  { %796 = vmatpush3.xpose.msra.mxu0 %v204_v1  ;;  %797 = vmatprep.mubr.msk.f32.mxu0 %vm1061_vm0, %v1060_v0  ;;  %v925_v63 = vpack.c.bf16 %v599_v62, %v598_v61  ;;  %v600_v1 = vld [vmem:[#allocation7 + $0x50] sm:$0xff] }
 0x136   :  { %800 = vmatprep.subr.mxu0 %v1060_v0  ;;  %914 = vmatprep.subr.bf16.mxu1 %v913_v56 }
 0x137   :  { %916 = vmatpush3.bf16.msra.mxu1 %v913_v56 }
 0x138   :  { %798 = vmatmul.mubr.f32.vlgmr.msra.gmra.mrb[6].mxu0 %v202_v2  ;;  %918 = vmatprep.subr.bf16.mxu1 %v917_v52  ;;  %v601_v2 = vld [vmem:[#allocation7 + $0x58] sm:$0xff] }
 0x139   :  { %802 = vmatprep.mubr.msk.f32.mxu0 %vm1061_vm0, %v1060_v0  ;;  %v789_v45 = vpop.f32.mrb[0].mxu1  ;;  %v929_v3 = vpack.c.bf16 %v601_v2, %v600_v1 }
 0x13a   :  { %v272_v46 = vpop.f32.mrb[1].mxu1  ;;  %v278_v47 = vadd.f32 %v789_v45, %v125_v44 }
 0x13b   :  { %v273_v48 = vadd.f32 %v272_v46, %v125_v44  ;;  %920 = vmatpush3.bf16.msra.mxu1 %v917_v52 }
 0x13c   :  { %922 = vmatprep.subr.bf16.mxu1 %v921_v60 }
 0x13d   :  { %801 = vmatpush3.msra.mxu0 %v273_v48 }
 0x13e   :  { %805 = vmatprep.subr.mxu0 %v1060_v0 }
 0x13f   :  { %924 = vmatpush3.bf16.msra.mxu1 %v921_v60 }
 0x140   :  { %926 = vmatprep.subr.bf16.mxu1 %v925_v63 }
 0x143   :  { %928 = vmatpush3.bf16.msra.mxu1 %v925_v63 }
 0x144   :  { %930 = vmatprep.subr.bf16.mxu1 %v929_v3 }
 0x147   :  { %932 = vmatpush3.bf16.msra.mxu1 %v929_v3 }
 0x148   :  { %934 = vmatprep.subr.bf16.mxu1 %v933_v6 }
 0x14b   :  { %936 = vmatpush3.bf16.msra.mxu1 %v933_v6 }
 0x14c   :  { %938 = vmatprep.subr.bf16.mxu1 %v937_v15 }
 0x14f   :  { %940 = vmatpush3.bf16.msra.mxu1 %v937_v15 }
 0x207   :  { %v347_v27 = vpop.f32.mrb[4].mxu0 }
 0x208   :  { %v794_v28 = vpop.f32.mrb[5].mxu0  ;;  %v422_v29 = vsel %vm421_vm1, %v347_v27, -inf }
 0x209   :  { %423 = vmax.xlane.f32.xlu0 %v422_v29 }
 0x20b   :  { %v417_v30 = vpop.f32.mrb[6].mxu0 }
 0x20c   :  { %v799_v31 = vpop.f32.mrb[7].mxu0  ;;  %v425_v32 = vsel %vm421_vm1, %v417_v30, -inf }
 0x20d   :  { %426 = vmax.xlane.f32.xlu0 %v425_v32 }
 0x296   :  { %v424_v33 = vpop.xlane.xlu0 %423 }
 0x297   :  { %v428_v34 = vsub.f32 %v347_v27, %v424_v33 }
 0x299   :  { %v430_v35 = vmul.f32 1.442695, %v428_v34 }
 0x29a   :  { %v427_v36 = vpop.xlane.xlu0 %426 }
 0x29b   :  { %951 = vpow2.f32 %v430_v35  ;;  %v429_v37 = vsub.f32 %v417_v30, %v427_v36 }
 0x29d   :  { %v432_v38 = vmul.f32 1.442695, %v429_v37 }
 0x29f   :  { %953 = vpow2.f32 %v432_v38 }
 0x2a5   :  { %v952_v39 = vpop.eup %951 }
 0x2a6   :  { %v434_v40 = vsel %vm421_vm1, %v952_v39, 0.0 }
 0x2a7   :  { %435 = vadd.xlane.f32.xlu1 %v434_v40 }
 0x2a9   :  { %v954_v41 = vpop.eup %953 }
 0x2aa   :  { %v437_v42 = vsel %vm421_vm1, %v954_v41, 0.0 }
 0x2ab   :  { %438 = vadd.xlane.f32.xlu1 %v437_v42 }
 0x334   :  { %v436_v7 = vpop.xlane.xlu1 %435 }
 0x335   :  { %955 = vrcp.f32 %v436_v7 }
 0x338   :  { %v439_v8 = vpop.xlane.xlu1 %438 }
 0x339   :  { %957 = vrcp.f32 %v439_v8 }
 0x33f   :  { %v956_v9 = vpop.eup %955 }
 0x340   :  { %v442_v10 = vmul.f32 %v956_v9, %v952_v39 }
 0x342   :  { %803 = vmatmul.mubr.msk.f32.vlgmr.msra.gmra.mrb[8].mxu0 %vm421_vm1, %v442_v10 }
 0x343   :  { %v958_v11 = vpop.eup %957  ;;  %806 = vmatpush3.msra.mxu0 %v278_v47  ;;  %807 = vmatprep.mubr.msk.f32.mxu0 %vm1061_vm0, %v1060_v0 }
 0x344   :  { %v443_v12 = vmul.f32 %v958_v11, %v954_v41 }
 0x346   :  { %808 = vmatmul.mubr.msk.f32.vlgmr.msra.gmra.mrb[10].mxu0 %vm421_vm1, %v443_v12 }
 0x415   :  { %v513_v16 = vpop.f32.mrb[8].mxu0 }
 0x416   :  { %v804_v17 = vpop.f32.mrb[9].mxu0  ;;  %842 = vmatprep.mubr.f32.mxu1 %v513_v16 }
 0x419   :  { %v586_v18 = vpop.f32.mrb[10].mxu0 }
 0x41a   :  { %v809_v19 = vpop.f32.mrb[11].mxu0  ;;  %843 = vmatmul.mubr.f32.vlgmr.msra.gmra.mrb[2].mxu1 %v586_v18 }
 0x4ed   :  { %v844_v0 = vpop.f32.mrb[2].mxu1 }
 0x4ee   :  { %v685_v21 = vadd.f32 %v844_v0, %v710_v20  ;;  %v679_v22 = vpop.f32.mrb[3].mxu1 }
 0x4ef   :  { %v680_v23 = vadd.f32 %v710_v20, %v679_v22 }
 0x4f0   :  { %689 = vst [vmem:[#allocation8 + $0x8] sm:$0xff] %v685_v21 }
 0x4f1   :  { %688 = vst [vmem:[#allocation8] sm:$0xff] %v680_v23 }
 0x4f2   :  { %1036 = shalt.err (!%p1033_p0)
}
 0x4f3   :  { %s1037_s4 = scalar_lea.hbm %s1195_s5, 256 }
 0x4f4   :  { %p1038_p1 = scmp.ne.s32.totalorder %s1195_s5, %s1037_s4  ;;  %p1041_p2 = scmp.lt.u32.totalorder %s1037_s4, %s1195_s5 }
 0x4f6   :  { %p1043_p3 = pnand %p1041_p2, %p1038_p1 }
 0x4f8   :  { %1046 = shalt.err (!%p1043_p3)
}
 0x4f9   :  { %701 = dma.vmem_to_hbm [thread:$0]  %s696_s9, 256, %s1195_s5, [#allocation4], %s1057_s1, %s1057_s1, %s1058_s17  }
 0x4fa   :  { %1051 = dma.done.wait [#allocation4], 256  }
 0x4fb   :  { %1052 = vsyncadd [#allocation4], 4294967040 }
 0x4fc   :  { %705 = vsyncpa [#allocation3], 1 }
 0x4fd   :  { %706 = vsyncpa [#allocation6], 1 }
 0x4fe   :  { %707 = vsyncpa [#allocation4], 1 }

// kernel: tpu_custom_call.1
= control target key start
LH: loop header
LB: loop body
LE: loop exit
PB: predicated region body
PF: predicated region fallthrough
CT: control target
= control target key end

     0   :  { %10 = vsyncpa [#allocation3], 0  ;;  %s1190_s0 = inlined_call_operand.hbm [shape: f32[16,128], index: 0, kind: input, shape index: {}]   ;;  %s1191_s1 = inlined_call_operand.hbm [shape: f32[128,384], index: 1, kind: input, shape index: {}]   ;;  %s1192_s2 = inlined_call_operand.vmem [shape: f32[1,384], index: 2, kind: input, shape index: {}]   ;;  %s1193_s3 = inlined_call_operand.hbm [shape: f32[128,128], index: 3, kind: input, shape index: {}]   ;;  %s1194_s4 = inlined_call_operand.vmem [shape: f32[1,128], index: 4, kind: input, shape index: {}]   ;;  %s1195_s5 = inlined_call_operand.hbm [shape: f32[16,128], index: 5, kind: output, shape index: {}]  }
   0x1   :  { %11 = vsyncpa [#allocation6], 0 }
   0x2   :  { %12 = vsyncpa [#allocation4], 0  ;;  %s1053_s18 = smov [#allocation5]   ;;  %s959_s22 = scalar_lea.hbm %s1191_s1, 6144 }
   0x3   :  { %s30_s19 = sshll.u32 %s1053_s18, 4  ;;  %p960_p0 = scmp.ne.s32.totalorder %s1191_s1, %s959_s22  ;;  %s31_s19 = int_to_ptr.vmem [resolvable:$true] %s30_s19 }
   0x4   :  { %p963_p1 = scmp.lt.u32.totalorder %s959_s22, %s1191_s1 }
   0x6   :  { %p965_p2 = pnand %p963_p1, %p960_p0 }
   0x8   :  { %968 = shalt.err (!%p965_p2)
}
   0x9   :  { %s969_s27 = scalar_lea.vmem %s31_s19, 6144  ;;  %p974_p4 = scmp.lt.s32.totalorder %s31_s19, %s31_s19 }
   0xa   :  { %p970_p3 = scmp.ne.s32.totalorder %s31_s19, %s969_s27  ;;  %p975_p5 = scmp.lt.s32.totalorder %s969_s27, %s969_s27 }
   0xc   :  { %p976_p6 = por %p975_p5, %p974_p4 }
   0xe   :  { %p977_p7 = pnand %p976_p6, %p970_p3 }
  0x10   :  { %980 = shalt.err (!%p977_p7)
}
  0x11   :  { %s1054_s28 = smov 384   ;;  %s1055_s29 = smov 24  }
  0x12   :  { %36 = dma.hbm_to_vmem [thread:$0]  %s1191_s1, 6144, %s31_s19, [#allocation6], %s1054_s28, %s1054_s28, %s1055_s29  }
  0x13   :  { %s1056_s7 = smov [#allocation2]   ;;  %s981_s11 = scalar_lea.hbm %s1190_s0, 256 }
  0x14   :  { %s18_s8 = sshll.u32 %s1056_s7, 4  ;;  %p982_p8 = scmp.ne.s32.totalorder %s1190_s0, %s981_s11  ;;  %s19_s8 = int_to_ptr.vmem [resolvable:$true] %s18_s8 }
  0x15   :  { %p985_p9 = scmp.lt.u32.totalorder %s981_s11, %s1190_s0 }
  0x17   :  { %p987_p10 = pnand %p985_p9, %p982_p8 }
  0x19   :  { %990 = shalt.err (!%p987_p10)
}
  0x1a   :  { %s991_s16 = scalar_lea.vmem %s19_s8, 256  ;;  %p996_p12 = scmp.lt.s32.totalorder %s19_s8, %s19_s8 }
  0x1b   :  { %p992_p11 = scmp.ne.s32.totalorder %s19_s8, %s991_s16  ;;  %p997_p13 = scmp.lt.s32.totalorder %s991_s16, %s991_s16 }
  0x1d   :  { %p998_p0 = por %p997_p13, %p996_p12 }
  0x1f   :  { %p999_p1 = pnand %p998_p0, %p992_p11 }
  0x21   :  { %1002 = shalt.err (!%p999_p1)
}
  0x22   :  { %s1057_s1 = smov 128   ;;  %s1058_s17 = smov 8  }
  0x23   :  { %24 = dma.hbm_to_vmem [thread:$0]  %s1190_s0, 256, %s19_s8, [#allocation3], %s1057_s1, %s1057_s1, %s1058_s17  }
  0x24   :  { %s1059_s20 = smov [#allocation7]   ;;  %s1003_s24 = scalar_lea.hbm %s1193_s3, 2048 }
  0x25   :  { %s44_s21 = sshll.u32 %s1059_s20, 4  ;;  %p1004_p2 = scmp.ne.s32.totalorder %s1193_s3, %s1003_s24  ;;  %s45_s21 = int_to_ptr.vmem [resolvable:$true] %s44_s21 }
  0x26   :  { %p1007_p3 = scmp.lt.u32.totalorder %s1003_s24, %s1193_s3 }
  0x28   :  { %p1009_p4 = pnand %p1007_p3, %p1004_p2 }
  0x2a   :  { %1012 = shalt.err (!%p1009_p4)
}
  0x2b   :  { %s1013_s29 = scalar_lea.vmem %s45_s21, 2048  ;;  %p1018_p6 = scmp.lt.s32.totalorder %s45_s21, %s45_s21 }
  0x2c   :  { %p1014_p5 = scmp.ne.s32.totalorder %s45_s21, %s1013_s29  ;;  %p1019_p7 = scmp.lt.s32.totalorder %s1013_s29, %s1013_s29 }
  0x2e   :  { %p1020_p8 = por %p1019_p7, %p1018_p6 }
  0x30   :  { %p1021_p9 = pnand %p1020_p8, %p1014_p5 }
  0x32   :  { %1024 = shalt.err (!%p1021_p9)
}
  0x33   :  { %50 = dma.hbm_to_vmem [thread:$0]  %s1193_s3, 2048, %s45_s21, [#allocation6], %s1057_s1, %s1057_s1, %s1058_s17  }
  0x34   :  { %1047 = dma.done.wait [#allocation3], 256  }
  0x35   :  { %1048 = vsyncadd [#allocation3], 4294967040 }
  0x36   :  { %1049 = dma.done.wait [#allocation6], 8192  }
  0x37   :  { %1050 = vsyncadd [#allocation6], 4294959104  ;;  %v1060_v0 = vmov 0.0   ;;  %v65_v1 = vld [vmem:[#allocation5 + $0x8] sm:$0xff]  ;;  %v68_v2 = vld [vmem:[#allocation5 + $0x20] sm:$0xff]  ;;  %vm1061_vm0 = vmmov 0   ;;  %v114_v51 = vlaneseq }
  0x38   :  { %193 = vmatprep.mubr.f32.mxu0 %v1060_v0  ;;  %v64_v3 = vld [vmem:[#allocation5] sm:$0xff]  ;;  %v845_v4 = vpack.c.bf16 %v68_v2, %v65_v1  ;;  %v67_v5 = vld [vmem:[#allocation5 + $0x18] sm:$0xff]  ;;  %v74_v7 = vld [vmem:[#allocation5 + $0x50] sm:$0xff]  ;;  %vm421_vm1 = vcmask 64512   ;;  %s1062_s8 = smov [#allocation8]  }
  0x39   :  { %v71_v6 = vld [vmem:[#allocation5 + $0x38] sm:$0xff]  ;;  %v847_v8 = vpack.c.bf16 %v67_v5, %v64_v3  ;;  %v70_v10 = vld [vmem:[#allocation5 + $0x30] sm:$0xff]  ;;  %v73_v11 = vld [vmem:[#allocation5 + $0x48] sm:$0xff]  ;;  %v1143_v52 = vshrl.u32 %v114_v51, 7  ;;  %s695_s9 = sshll.u32 %s1062_s8, 4  ;;  %s696_s9 = int_to_ptr.vmem [resolvable:$true] %s695_s9 }
  0x3a   :  { %v849_v9 = vpack.c.bf16 %v74_v7, %v71_v6  ;;  %v77_v12 = vld [vmem:[#allocation5 + $0x68] sm:$0xff]  ;;  %846 = vmatprep.subr.bf16.mxu0 %v845_v4  ;;  %v80_v13 = vld [vmem:[#allocation5 + $0x80] sm:$0xff]  ;;  %v851_v14 = vpack.c.bf16 %v73_v11, %v70_v10  ;;  %v79_v17 = vld [vmem:[#allocation5 + $0x78] sm:$0xff]  ;;  %s1025_s10 = scalar_lea.vmem %s696_s9, 256  ;;  %p1030_p11 = scmp.lt.s32.totalorder %s696_s9, %s696_s9 }
  0x3b   :  { %848 = vmatpush1.bf16.msra.mxu0 %v847_v8  ;;  %v853_v15 = vpack.c.bf16 %v80_v13, %v77_v12  ;;  %v76_v16 = vld [vmem:[#allocation5 + $0x60] sm:$0xff]  ;;  %v83_v18 = vld [vmem:[#allocation5 + $0x98] sm:$0xff]  ;;  %v86_v19 = vld [vmem:[#allocation5 + $0xb0] sm:$0xff]  ;;  %v120_v53 = vsub.s32 1, %v1143_v52  ;;  %v116_v55 = vsub.s32 0, %v1143_v52  ;;  %p1026_p10 = scmp.ne.s32.totalorder %s696_s9, %s1025_s10  ;;  %p1031_p12 = scmp.lt.s32.totalorder %s1025_s10, %s1025_s10 }
  0x3c   :  { %850 = vmatprep.subr.bf16.mxu0 %v849_v9  ;;  %v855_v20 = vpack.c.bf16 %v79_v17, %v76_v16  ;;  %v857_v21 = vpack.c.bf16 %v86_v19, %v83_v18  ;;  %v82_v22 = vld [vmem:[#allocation5 + $0x90] sm:$0xff]  ;;  %v85_v23 = vld [vmem:[#allocation5 + $0xa8] sm:$0xff]  ;;  %v92_v25 = vld [vmem:[#allocation5 + $0xe0] sm:$0xff] }
  0x3d   :  { %v89_v24 = vld [vmem:[#allocation5 + $0xc8] sm:$0xff]  ;;  %v62_v26 = vld [vmem:[#allocation2] sm:$0xff]  ;;  %v859_v27 = vpack.c.bf16 %v85_v23, %v82_v22  ;;  %v88_v29 = vld [vmem:[#allocation5 + $0xc0] sm:$0xff]  ;;  %p1032_p13 = por %p1031_p12, %p1030_p11 }
  0x3e   :  { %787 = vmatprep.mubr.f32.mxu1 %v62_v26  ;;  %v861_v28 = vpack.c.bf16 %v92_v25, %v89_v24  ;;  %v91_v30 = vld [vmem:[#allocation5 + $0xd8] sm:$0xff]  ;;  %v98_v32 = vld [vmem:[#allocation5 + $0x110] sm:$0xff]  ;;  %v97_v36 = vld [vmem:[#allocation5 + $0x108] sm:$0xff] }
  0x3f   :  { %852 = vmatpush1.bf16.msra.mxu0 %v851_v14  ;;  %v95_v31 = vld [vmem:[#allocation5 + $0xf8] sm:$0xff]  ;;  %v863_v33 = vpack.c.bf16 %v91_v30, %v88_v29  ;;  %v94_v35 = vld [vmem:[#allocation5 + $0xf0] sm:$0xff]  ;;  %v101_v37 = vld [vmem:[#allocation5 + $0x128] sm:$0xff]  ;;  %p1033_p0 = pnand %p1032_p13, %p1026_p10 }
  0x40   :  { %854 = vmatprep.subr.bf16.mxu0 %v853_v15  ;;  %v865_v34 = vpack.c.bf16 %v98_v32, %v95_v31  ;;  %v104_v38 = vld [vmem:[#allocation5 + $0x140] sm:$0xff]  ;;  %v867_v39 = vpack.c.bf16 %v97_v36, %v94_v35  ;;  %v103_v42 = vld [vmem:[#allocation5 + $0x138] sm:$0xff]  ;;  %v110_v44 = vld [vmem:[#allocation5 + $0x170] sm:$0xff] }
  0x41   :  { %v869_v40 = vpack.c.bf16 %v104_v38, %v101_v37  ;;  %v100_v41 = vld [vmem:[#allocation5 + $0x120] sm:$0xff]  ;;  %v107_v43 = vld [vmem:[#allocation5 + $0x158] sm:$0xff]  ;;  %v106_v47 = vld [vmem:[#allocation5 + $0x150] sm:$0xff] }
  0x42   :  { %v871_v45 = vpack.c.bf16 %v103_v42, %v100_v41  ;;  %v873_v46 = vpack.c.bf16 %v110_v44, %v107_v43  ;;  %v109_v48 = vld [vmem:[#allocation5 + $0x168] sm:$0xff]  ;;  %v1138_v50 = vld [vmem:[#allocation2 + $0x8] sm:$0xff]  ;;  %v1149_v54 = vld [vmem:[%s1192_s2] sm:$0x7]  ;;  %v124_v43 = vsub.s32 2, %v1143_v52 }
  0x43   :  { %856 = vmatpush1.bf16.msra.mxu0 %v855_v20  ;;  %v875_v49 = vpack.c.bf16 %v109_v48, %v106_v47  ;;  %v121_v56 = vrot.slane %v1149_v54, %v120_v53  ;;  %v117_v58 = vrot.slane %v1149_v54, %v116_v55  ;;  %v66_v3 = vld [vmem:[#allocation5 + $0x10] sm:$0xff]  ;;  %v69_v4 = vld [vmem:[#allocation5 + $0x28] sm:$0xff]  ;;  %v72_v5 = vld [vmem:[#allocation5 + $0x40] sm:$0xff] }
  0x44   :  { %858 = vmatprep.subr.bf16.mxu0 %v857_v21  ;;  %v877_v6 = vpack.c.bf16 %v69_v4, %v66_v3  ;;  %v75_v7 = vld [vmem:[#allocation5 + $0x58] sm:$0xff]  ;;  %v78_v9 = vld [vmem:[#allocation5 + $0x70] sm:$0xff]  ;;  %v81_v10 = vld [vmem:[#allocation5 + $0x88] sm:$0xff]  ;;  %v125_v44 = vrot.slane %v1149_v54, %v124_v43 }
  0x45   :  { %v881_v8 = vpack.c.bf16 %v75_v7, %v72_v5  ;;  %v885_v11 = vpack.c.bf16 %v81_v10, %v78_v9  ;;  %v84_v12 = vld [vmem:[#allocation5 + $0xa0] sm:$0xff]  ;;  %v87_v13 = vld [vmem:[#allocation5 + $0xb8] sm:$0xff]  ;;  %v90_v15 = vld [vmem:[#allocation5 + $0xd0] sm:$0xff] }
  0x46   :  { %878 = vmatprep.subr.bf16.mxu1 %v877_v6  ;;  %v889_v14 = vpack.c.bf16 %v87_v13, %v84_v12  ;;  %v93_v16 = vld [vmem:[#allocation5 + $0xe8] sm:$0xff]  ;;  %v96_v18 = vld [vmem:[#allocation5 + $0x100] sm:$0xff]  ;;  %v99_v19 = vld [vmem:[#allocation5 + $0x118] sm:$0xff] }
  0x47   :  { %860 = vmatpush1.bf16.msra.mxu0 %v859_v27  ;;  %880 = vmatpush3.bf16.msra.mxu1 %v877_v6  ;;  %v893_v17 = vpack.c.bf16 %v93_v16, %v90_v15  ;;  %v897_v20 = vpack.c.bf16 %v99_v19, %v96_v18  ;;  %v102_v21 = vld [vmem:[#allocation5 + $0x130] sm:$0xff]  ;;  %v105_v22 = vld [vmem:[#allocation5 + $0x148] sm:$0xff]  ;;  %v108_v24 = vld [vmem:[#allocation5 + $0x160] sm:$0xff] }
  0x48   :  { %862 = vmatprep.subr.bf16.mxu0 %v861_v28  ;;  %882 = vmatprep.subr.bf16.mxu1 %v881_v8  ;;  %v901_v23 = vpack.c.bf16 %v105_v22, %v102_v21  ;;  %v111_v25 = vld [vmem:[#allocation5 + $0x178] sm:$0xff]  ;;  %v592_v51 = vld [vmem:[#allocation7 + $0x10] sm:$0xff]  ;;  %v602_v4 = vld [vmem:[#allocation7 + $0x60] sm:$0xff] }
  0x49   :  { %v593_v55 = vld [vmem:[#allocation7 + $0x18] sm:$0xff]  ;;  %v596_v54 = vld [vmem:[#allocation7 + $0x30] sm:$0xff]  ;;  %v603_v5 = vld [vmem:[#allocation7 + $0x68] sm:$0xff] }
  0x4a   :  { %v933_v6 = vpack.c.bf16 %v603_v5, %v602_v4  ;;  %v604_v13 = vld [vmem:[#allocation7 + $0x70] sm:$0xff] }
  0x4b   :  { %864 = vmatpush1.bf16.msra.mxu0 %v863_v33  ;;  %884 = vmatpush3.bf16.msra.mxu1 %v881_v8 }
  0x4c   :  { %866 = vmatprep.subr.bf16.mxu0 %v865_v34  ;;  %886 = vmatprep.subr.bf16.mxu1 %v885_v11 }
  0x4f   :  { %868 = vmatpush1.bf16.msra.mxu0 %v867_v39  ;;  %888 = vmatpush3.bf16.msra.mxu1 %v885_v11 }
  0x50   :  { %870 = vmatprep.subr.bf16.mxu0 %v869_v40  ;;  %890 = vmatprep.subr.bf16.mxu1 %v889_v14 }
  0x53   :  { %872 = vmatpush1.bf16.msra.mxu0 %v871_v45  ;;  %892 = vmatpush3.bf16.msra.mxu1 %v889_v14  ;;  %v605_v14 = vld [vmem:[#allocation7 + $0x78] sm:$0xff] }
  0x54   :  { %874 = vmatprep.subr.bf16.mxu0 %v873_v46  ;;  %894 = vmatprep.subr.bf16.mxu1 %v893_v17  ;;  %v937_v15 = vpack.c.bf16 %v605_v14, %v604_v13 }
  0x57   :  { %876 = vmatpush1.bf16.msra.mxu0 %v875_v49  ;;  %896 = vmatpush3.bf16.msra.mxu1 %v893_v17  ;;  %v590_v49 = vld [vmem:[#allocation7] sm:$0xff] }
  0x58   :  { %790 = vmatprep.subr.mxu0 %v1060_v0  ;;  %898 = vmatprep.subr.bf16.mxu1 %v897_v20 }
  0x5a   :  { %194 = vmatmul.mubr.f32.vlgmr.msra.gmra.mrb[0].mxu0 %v62_v26  ;;  %v905_v26 = vpack.c.bf16 %v111_v25, %v108_v24 }
  0x5b   :  { %199 = vmatprep.mubr.f32.mxu0 %v1060_v0  ;;  %900 = vmatpush3.bf16.msra.mxu1 %v897_v20  ;;  %v710_v20 = vld [vmem:[%s1194_s4] ss:$0 sm:$0xff] }
  0x5c   :  { %902 = vmatprep.subr.bf16.mxu1 %v901_v23 }
  0x5e   :  { %200 = vmatmul.mubr.f32.gmra.mrb[2].mxu0 %v1138_v50 }
  0x5f   :  { %792 = vmatprep.mubr.msk.f32.mxu0 %vm1061_vm0, %v1060_v0  ;;  %904 = vmatpush3.bf16.msra.mxu1 %v901_v23 }
  0x60   :  { %906 = vmatprep.subr.bf16.mxu1 %v905_v26 }
  0x63   :  { %908 = vmatpush3.bf16.msra.mxu1 %v905_v26 }
  0x66   :  { %788 = vmatmul.mubr.f32.vlgmr.msra.gmra.mrb[0].mxu1 %v1138_v50  ;;  %v591_v50 = vld [vmem:[#allocation7 + $0x8] sm:$0xff] }
  0x67   :  { %v909_v53 = vpack.c.bf16 %v591_v50, %v590_v49 }
  0x69   :  { %910 = vmatprep.subr.bf16.mxu1 %v909_v53 }
  0x6a   :  { %912 = vmatpush3.bf16.msra.mxu1 %v909_v53 }
 0x12d   :  { %v195_v57 = vpop.f32.mrb[0].mxu0 }
 0x12e   :  { %v197_v59 = vpop.f32.mrb[1].mxu0  ;;  %v196_v62 = vadd.f32 %v195_v57, %v117_v58  ;;  %v594_v57 = vld [vmem:[#allocation7 + $0x20] sm:$0xff] }
 0x12f   :  { %v198_v60 = vadd.f32 %v197_v59, %v121_v56  ;;  %v597_v59 = vld [vmem:[#allocation7 + $0x38] sm:$0xff] }
 0x131   :  { %v201_v61 = vpop.f32.mrb[2].mxu0  ;;  %791 = vmatpush3.xpose.msra.mxu0 %v198_v60  ;;  %v921_v60 = vpack.c.bf16 %v597_v59, %v596_v54 }
 0x132   :  { %v203_v63 = vpop.f32.mrb[3].mxu0  ;;  %795 = vmatprep.subr.mxu0 %v1060_v0  ;;  %v202_v2 = vadd.f32 %v201_v61, %v117_v58  ;;  %v595_v58 = vld [vmem:[#allocation7 + $0x28] sm:$0xff]  ;;  %v598_v61 = vld [vmem:[#allocation7 + $0x40] sm:$0xff] }
 0x133   :  { %v204_v1 = vadd.f32 %v203_v63, %v121_v56  ;;  %v913_v56 = vpack.c.bf16 %v593_v55, %v592_v51  ;;  %v917_v52 = vpack.c.bf16 %v595_v58, %v594_v57 }
 0x134   :  { %793 = vmatmul.mubr.f32.vlgmr.msra.gmra.mrb[4].mxu0 %v196_v62  ;;  %v599_v62 = vld [vmem:[#allocation7 + $0x48] sm:$0xff] }
 0x135   :  { %796 = vmatpush3.xpose.msra.mxu0 %v204_v1  ;;  %797 = vmatprep.mubr.msk.f32.mxu0 %vm1061_vm0, %v1060_v0  ;;  %v925_v63 = vpack.c.bf16 %v599_v62, %v598_v61  ;;  %v600_v1 = vld [vmem:[#allocation7 + $0x50] sm:$0xff] }
 0x136   :  { %800 = vmatprep.subr.mxu0 %v1060_v0  ;;  %914 = vmatprep.subr.bf16.mxu1 %v913_v56 }
 0x137   :  { %916 = vmatpush3.bf16.msra.mxu1 %v913_v56 }
 0x138   :  { %798 = vmatmul.mubr.f32.vlgmr.msra.gmra.mrb[6].mxu0 %v202_v2  ;;  %918 = vmatprep.subr.bf16.mxu1 %v917_v52  ;;  %v601_v2 = vld [vmem:[#allocation7 + $0x58] sm:$0xff] }
 0x139   :  { %802 = vmatprep.mubr.msk.f32.mxu0 %vm1061_vm0, %v1060_v0  ;;  %v789_v45 = vpop.f32.mrb[0].mxu1  ;;  %v929_v3 = vpack.c.bf16 %v601_v2, %v600_v1 }
 0x13a   :  { %v272_v46 = vpop.f32.mrb[1].mxu1  ;;  %v278_v47 = vadd.f32 %v789_v45, %v125_v44 }
 0x13b   :  { %v273_v48 = vadd.f32 %v272_v46, %v125_v44  ;;  %920 = vmatpush3.bf16.msra.mxu1 %v917_v52 }
 0x13c   :  { %922 = vmatprep.subr.bf16.mxu1 %v921_v60 }
 0x13d   :  { %801 = vmatpush3.msra.mxu0 %v273_v48 }
 0x13e   :  { %805 = vmatprep.subr.mxu0 %v1060_v0 }
 0x13f   :  { %924 = vmatpush3.bf16.msra.mxu1 %v921_v60 }
 0x140   :  { %926 = vmatprep.subr.bf16.mxu1 %v925_v63 }
 0x143   :  { %928 = vmatpush3.bf16.msra.mxu1 %v925_v63 }
 0x144   :  { %930 = vmatprep.subr.bf16.mxu1 %v929_v3 }
 0x147   :  { %932 = vmatpush3.bf16.msra.mxu1 %v929_v3 }
 0x148   :  { %934 = vmatprep.subr.bf16.mxu1 %v933_v6 }
 0x14b   :  { %936 = vmatpush3.bf16.msra.mxu1 %v933_v6 }
 0x14c   :  { %938 = vmatprep.subr.bf16.mxu1 %v937_v15 }
 0x14f   :  { %940 = vmatpush3.bf16.msra.mxu1 %v937_v15 }
 0x207   :  { %v347_v27 = vpop.f32.mrb[4].mxu0 }
 0x208   :  { %v794_v28 = vpop.f32.mrb[5].mxu0  ;;  %v422_v29 = vsel %vm421_vm1, %v347_v27, -inf }
 0x209   :  { %423 = vmax.xlane.f32.xlu0 %v422_v29 }
 0x20b   :  { %v417_v30 = vpop.f32.mrb[6].mxu0 }
 0x20c   :  { %v799_v31 = vpop.f32.mrb[7].mxu0  ;;  %v425_v32 = vsel %vm421_vm1, %v417_v30, -inf }
 0x20d   :  { %426 = vmax.xlane.f32.xlu0 %v425_v32 }
 0x296   :  { %v424_v33 = vpop.xlane.xlu0 %423 }
 0x297   :  { %v428_v34 = vsub.f32 %v347_v27, %v424_v33 }
 0x299   :  { %v430_v35 = vmul.f32 1.442695, %v428_v34 }
 0x29a   :  { %v427_v36 = vpop.xlane.xlu0 %426 }
 0x29b   :  { %951 = vpow2.f32 %v430_v35  ;;  %v429_v37 = vsub.f32 %v417_v30, %v427_v36 }
 0x29d   :  { %v432_v38 = vmul.f32 1.442695, %v429_v37 }
 0x29f   :  { %953 = vpow2.f32 %v432_v38 }
 0x2a5   :  { %v952_v39 = vpop.eup %951 }
 0x2a6   :  { %v434_v40 = vsel %vm421_vm1, %v952_v39, 0.0 }
 0x2a7   :  { %435 = vadd.xlane.f32.xlu1 %v434_v40 }
 0x2a9   :  { %v954_v41 = vpop.eup %953 }
 0x2aa   :  { %v437_v42 = vsel %vm421_vm1, %v954_v41, 0.0 }
 0x2ab   :  { %438 = vadd.xlane.f32.xlu1 %v437_v42 }
 0x334   :  { %v436_v7 = vpop.xlane.xlu1 %435 }
 0x335   :  { %955 = vrcp.f32 %v436_v7 }
 0x338   :  { %v439_v8 = vpop.xlane.xlu1 %438 }
 0x339   :  { %957 = vrcp.f32 %v439_v8 }
 0x33f   :  { %v956_v9 = vpop.eup %955 }
 0x340   :  { %v442_v10 = vmul.f32 %v956_v9, %v952_v39 }
 0x342   :  { %803 = vmatmul.mubr.msk.f32.vlgmr.msra.gmra.mrb[8].mxu0 %vm421_vm1, %v442_v10 }
 0x343   :  { %v958_v11 = vpop.eup %957  ;;  %806 = vmatpush3.msra.mxu0 %v278_v47  ;;  %807 = vmatprep.mubr.msk.f32.mxu0 %vm1061_vm0, %v1060_v0 }
 0x344   :  { %v443_v12 = vmul.f32 %v958_v11, %v954_v41 }
 0x346   :  { %808 = vmatmul.mubr.msk.f32.vlgmr.msra.gmra.mrb[10].mxu0 %vm421_vm1, %v443_v12 }
 0x415   :  { %v513_v16 = vpop.f32.mrb[8].mxu0 }
 0x416   :  { %v804_v17 = vpop.f32.mrb[9].mxu0  ;;  %842 = vmatprep.mubr.f32.mxu1 %v513_v16 }
 0x419   :  { %v586_v18 = vpop.f32.mrb[10].mxu0 }
 0x41a   :  { %v809_v19 = vpop.f32.mrb[11].mxu0  ;;  %843 = vmatmul.mubr.f32.vlgmr.msra.gmra.mrb[2].mxu1 %v586_v18 }
 0x4ed   :  { %v844_v0 = vpop.f32.mrb[2].mxu1 }
 0x4ee   :  { %v685_v21 = vadd.f32 %v844_v0, %v710_v20  ;;  %v679_v22 = vpop.f32.mrb[3].mxu1 }
 0x4ef   :  { %v680_v23 = vadd.f32 %v710_v20, %v679_v22 }
 0x4f0   :  { %689 = vst [vmem:[#allocation8 + $0x8] sm:$0xff] %v685_v21 }
 0x4f1   :  { %688 = vst [vmem:[#allocation8] sm:$0xff] %v680_v23 }
 0x4f2   :  { %1036 = shalt.err (!%p1033_p0)
}
 0x4f3   :  { %s1037_s4 = scalar_lea.hbm %s1195_s5, 256 }
 0x4f4   :  { %p1038_p1 = scmp.ne.s32.totalorder %s1195_s5, %s1037_s4  ;;  %p1041_p2 = scmp.lt.u32.totalorder %s1037_s4, %s1195_s5 }
 0x4f6   :  { %p1043_p3 = pnand %p1041_p2, %p1038_p1 }
 0x4f8   :  { %1046 = shalt.err (!%p1043_p3)
}
 0x4f9   :  { %701 = dma.vmem_to_hbm [thread:$0]  %s696_s9, 256, %s1195_s5, [#allocation4], %s1057_s1, %s1057_s1, %s1058_s17  }
 0x4fa   :  { %1051 = dma.done.wait [#allocation4], 256  }
 0x4fb   :  { %1052 = vsyncadd [#allocation4], 4294967040 }
 0x4fc   :  { %705 = vsyncpa [#allocation3], 1 }
 0x4fd   :  { %706 = vsyncpa [#allocation6], 1 }
 0x4fe   :  { %707 = vsyncpa [#allocation4], 1 }

</bundles_post_ra>
